<compile_context>
chip_gen: v7x
topology: tpu7x:2x2x1
jax: 0.10.0
libtpu: 0.0.40
codegen_flags: <defaults>
</compile_context>

<pallas_src>
import functools

import jax
import jax.numpy as jnp
import numpy as np
from jax.experimental import pallas as pl
from jax.experimental.pallas import tpu as pltpu

HIDDEN = 256


def idm_kernel(x_ref, c0_hbm, c1_hbm, bias_ref, out_ref,
               c0_v, c1_v, dma_sems, *, dinp):
    """Fused 8-layer MLP; two consolidated weight DMAs overlap the MXU chain."""
    H = HIDDEN
    bf16 = jnp.bfloat16

    # Two weight copies (instead of nine); waits are lazy.
    cp0 = pltpu.make_async_copy(c0_hbm, c0_v, dma_sems.at[0])
    cp1 = pltpu.make_async_copy(c1_hbm, c1_v, dma_sems.at[1])
    cp0.start()
    cp1.start()

    x = x_ref[...]                                   # (bp, dinp) bf16, kept for skip path

    # Row offsets inside the packed slabs (all multiples of 16 -> tile aligned,
    # so the static slices below are free views, no relayout copies).
    r_w1, r_w5x = 0, dinp
    r_w2, r_w3, r_w4 = 2 * dinp, 2 * dinp + H, 2 * dinp + 2 * H
    r_w5h, r_w6, r_w7, r_w8 = 0, H, 2 * H, 3 * H

    def lin_relu(h_bf16, w_vmem, r0, rows, b_row):
        y = jnp.dot(h_bf16, w_vmem[r0:r0 + rows, :],
                    preferred_element_type=jnp.float32)
        y = y + bias_ref[b_row:b_row + 1, :]
        return jnp.maximum(y, 0.0)                   # f32

    cp0.wait()
    h = lin_relu(x, c0_v, r_w1, dinp, 0)             # layer 1

    # Hoisted skip path: x @ W5x is independent of h1..h4 and its weight is
    # already resident -> keep it off the tail of the serial chain.
    skip = jnp.dot(x, c0_v[r_w5x:r_w5x + dinp, :],
                   preferred_element_type=jnp.float32)

    h = lin_relu(h.astype(bf16), c0_v, r_w2, H, 1)   # layer 2
    h = lin_relu(h.astype(bf16), c0_v, r_w3, H, 2)   # layer 3
    h = lin_relu(h.astype(bf16), c0_v, r_w4, H, 3)   # layer 4

    cp1.wait()
    # concat(h4, x) @ W5  ==  h4 @ W5h + x @ W5x   (Dropout is identity at inference)
    y5 = (jnp.dot(h.astype(bf16), c1_v[r_w5h:r_w5h + H, :],
                  preferred_element_type=jnp.float32)
          + skip + bias_ref[4:5, :])
    h = jnp.maximum(y5, 0.0)                         # layer 5

    h = lin_relu(h.astype(bf16), c1_v, r_w6, H, 5)   # layer 6
    h = lin_relu(h.astype(bf16), c1_v, r_w7, H, 6)   # layer 7
    h = lin_relu(h.astype(bf16), c1_v, r_w8, H, 7)   # layer 8 (+ final ReLU)

    out_ref[...] = h.astype(out_ref.dtype)


def _round_up(v, m):
    return ((v + m - 1) // m) * m


def _pad2d(a, rows, cols):
    return jnp.pad(a, ((0, rows - a.shape[0]), (0, cols - a.shape[1])))


def inverse_dynamics_forward(x, params):
    """x: (B, input_dim) f32; params: 8 (W, b) f32 pairs matching the PyTorch module."""
    B, input_dim = x.shape
    output_dim = params[-1][0].shape[1]

    (w1, b1), (w2, b2), (w3, b3), (w4, b4), (w5, b5), (w6, b6), (w7, b7), (w8, b8) = params
    # split W5 rows: first 256 rows multiply h4, remaining input_dim rows multiply x
    w5h, w5x = w5[:HIDDEN, :], w5[HIDDEN:, :]

    # bf16-friendly padding (all padding is zeros -> math unchanged).
    bp = _round_up(B, 16)
    dinp = _round_up(input_dim, 16)
    ncol = HIDDEN                      # all packed weights padded to 256 lane-dense cols

    bf16 = jnp.bfloat16
    x_p = _pad2d(x, bp, dinp).astype(bf16)

    # Pack weights into 2 contiguous bf16 slabs -> 2 DMA descriptors instead of 9.
    chunk0 = jnp.concatenate(
        [_pad2d(w1, dinp, ncol), _pad2d(w5x, dinp, ncol), w2, w3, w4],
        axis=0).astype(bf16)                          # (2*dinp + 3*256, 256)
    chunk1 = jnp.concatenate(
        [w5h, w6, w7, _pad2d(w8, HIDDEN, ncol)],
        axis=0).astype(bf16)                          # (4*256, 256)

    # Stack the 8 biases into one (8, 256) f32 input -> 1 prologue DMA instead of 8.
    bias = jnp.concatenate([b1, b2, b3, b4, b5, b6, b7, _pad2d(b8, 1, ncol)], axis=0)

    vmem = pltpu.MemorySpace.VMEM
    flops = 2 * bp * ncol * (chunk0.shape[0] + chunk1.shape[0])
    bytes_accessed = (x_p.size * 2 + chunk0.size * 2 + chunk1.size * 2
                      + bias.size * 4 + bp * ncol * 4)

    out = pl.pallas_call(
        functools.partial(idm_kernel, dinp=dinp),
        out_shape=jax.ShapeDtypeStruct((bp, ncol), jnp.float32),
        in_specs=[pl.BlockSpec(memory_space=vmem),     # x (tiny, auto-copied)
                  pl.BlockSpec(memory_space=pl.ANY),   # packed weight chunk 0 (stays HBM)
                  pl.BlockSpec(memory_space=pl.ANY),   # packed weight chunk 1 (stays HBM)
                  pl.BlockSpec(memory_space=vmem)],    # stacked biases (8 KB)
        out_specs=pl.BlockSpec(memory_space=vmem),
        scratch_shapes=[pltpu.VMEM(chunk0.shape, bf16),
                        pltpu.VMEM(chunk1.shape, bf16),
                        pltpu.SemaphoreType.DMA((2,))],
        cost_estimate=pl.CostEstimate(flops=int(flops), transcendentals=0,
                                      bytes_accessed=int(bytes_accessed)),
    )(x_p, chunk0, chunk1, bias)

    return out[:B, :output_dim]


def init_params(key, input_dim, output_dim):
    """Deterministic synthetic parameters (shapes match the PyTorch module)."""
    dims_in = [input_dim, HIDDEN, HIDDEN, HIDDEN, HIDDEN + input_dim, HIDDEN, HIDDEN, HIDDEN]
    dims_out = [HIDDEN, HIDDEN, HIDDEN, HIDDEN, HIDDEN, HIDDEN, HIDDEN, output_dim]
    params = []
    keys = jax.random.split(key, 2 * len(dims_in))
    for i, (din, d_out) in enumerate(zip(dims_in, dims_out)):
        scale = 1.0 / np.sqrt(din)
        w = jax.random.uniform(keys[2 * i], (din, d_out), jnp.float32, -scale, scale)
        b = jax.random.uniform(keys[2 * i + 1], (1, d_out), jnp.float32, -scale, scale)
        params.append((w, b))
    return params


def reference_forward_f32(x, params):
    """Pure f32 reference == the PyTorch module at inference."""
    (w1, b1), (w2, b2), (w3, b3), (w4, b4), (w5, b5), (w6, b6), (w7, b7), (w8, b8) = params
    relu = lambda v: jnp.maximum(v, 0.0)
    h = relu(x @ w1 + b1)
    h = relu(h @ w2 + b2)
    h = relu(h @ w3 + b3)
    h = relu(h @ w4 + b4)
    c = jnp.concatenate([h, x], axis=-1)
    h = relu(c @ w5 + b5)
    h = relu(h @ w6 + b6)
    h = relu(h @ w7 + b7)
    return relu(h @ w8 + b8)


def reference_forward_matched(x, params):
    """Reference mirroring the kernel's dtypes: bf16 weights/activations into the
    dots, f32 accumulation, f32 bias add and ReLU."""
    (w1, b1), (w2, b2), (w3, b3), (w4, b4), (w5, b5), (w6, b6), (w7, b7), (w8, b8) = params
    bf16 = jnp.bfloat16

    def lin(h, w, b):
        y = jnp.dot(h.astype(bf16), w.astype(bf16),
                    preferred_element_type=jnp.float32) + b
        return jnp.maximum(y, 0.0)

    h = lin(x, w1, b1)
    h = lin(h, w2, b2)
    h = lin(h, w3, b3)
    h = lin(h, w4, b4)
    c = jnp.concatenate([h, x], axis=-1)
    h = lin(c, w5, b5)
    h = lin(h, w6, b6)
    h = lin(h, w7, b7)
    return lin(h, w8, b8)


if __name__ == "__main__":
    key = jax.random.PRNGKey(0)
    kx, kp = jax.random.split(key)

    batch = 8
    input_dim = 7    # achieved delta pose (proprioceptive vector)
    output_dim = 7   # commanded action

    x = jax.random.normal(kx, (batch, input_dim), jnp.float32)
    params = init_params(kp, input_dim, output_dim)

    y = jax.block_until_ready(inverse_dynamics_forward(x, params))
    assert y.shape == (batch, output_dim)

    # Tight check against a dtype-matched (bf16 weight) reference.
    y_ref = reference_forward_matched(x, params)
    np.testing.assert_allclose(np.asarray(y), np.asarray(y_ref), rtol=2e-2, atol=1e-5)

    # Loose sanity check against the pure-f32 module semantics (bf16 weights imply
    # a small relative error).
    y_f32 = reference_forward_f32(x, params)
    np.testing.assert_allclose(np.asarray(y), np.asarray(y_f32), rtol=2e-1, atol=5e-3)

    print("KERNEL_OK")
</pallas_src>

<mosaic_0001>
module attributes {stable_mosaic.version = 11 : i64} {
  func.func @idm_kernel(%arg0: memref<16x16xbf16, #tpu.memory_space<vmem>>, %arg1: memref<800x256xbf16, #tpu.memory_space<any>>, %arg2: memref<1024x256xbf16, #tpu.memory_space<any>>, %arg3: memref<8x256xf32, #tpu.memory_space<vmem>>, %arg4: memref<16x256xf32, #tpu.memory_space<vmem>>, %arg5: memref<800x256xbf16, #tpu.memory_space<vmem>>, %arg6: memref<1024x256xbf16, #tpu.memory_space<vmem>>, %arg7: memref<2x!tpu.dma_semaphore, #tpu.memory_space<semaphore_mem>>) attributes {dimension_semantics = [], scalar_prefetch = 0 : i64, scratch_operands = 3 : i64, tpu.core_type = #tpu.core_type<tc>} {
    %c0_i32 = arith.constant 0 : i32
    %0 = tpu.memref_slice %arg7[%c0_i32] : memref<2x!tpu.dma_semaphore, #tpu.memory_space<semaphore_mem>> -> memref<1x!tpu.dma_semaphore, #tpu.memory_space<semaphore_mem>>
    %1 = tpu.memref_squeeze %0 : memref<1x!tpu.dma_semaphore, #tpu.memory_space<semaphore_mem>> -> memref<!tpu.dma_semaphore, #tpu.memory_space<semaphore_mem>>
    tpu.enqueue_dma source(%arg1 : memref<800x256xbf16, #tpu.memory_space<any>>) target(%arg5 : memref<800x256xbf16, #tpu.memory_space<vmem>>) target_semaphore(%1 : memref<!tpu.dma_semaphore, #tpu.memory_space<semaphore_mem>>)
    %c1_i32 = arith.constant 1 : i32
    %2 = tpu.memref_slice %arg7[%c1_i32] : memref<2x!tpu.dma_semaphore, #tpu.memory_space<semaphore_mem>> -> memref<1x!tpu.dma_semaphore, #tpu.memory_space<semaphore_mem>>
    %3 = tpu.memref_squeeze %2 : memref<1x!tpu.dma_semaphore, #tpu.memory_space<semaphore_mem>> -> memref<!tpu.dma_semaphore, #tpu.memory_space<semaphore_mem>>
    tpu.enqueue_dma source(%arg2 : memref<1024x256xbf16, #tpu.memory_space<any>>) target(%arg6 : memref<1024x256xbf16, #tpu.memory_space<vmem>>) target_semaphore(%3 : memref<!tpu.dma_semaphore, #tpu.memory_space<semaphore_mem>>)
    %c0 = arith.constant 0 : index
    %c0_0 = arith.constant 0 : index
    %4 = vector.load %arg0[%c0, %c0_0] : memref<16x16xbf16, #tpu.memory_space<vmem>>, vector<16x16xbf16>
    %c0_i32_1 = arith.constant 0 : i32
    %5 = tpu.memref_slice %arg7[%c0_i32_1] : memref<2x!tpu.dma_semaphore, #tpu.memory_space<semaphore_mem>> -> memref<1x!tpu.dma_semaphore, #tpu.memory_space<semaphore_mem>>
    %6 = tpu.memref_squeeze %5 : memref<1x!tpu.dma_semaphore, #tpu.memory_space<semaphore_mem>> -> memref<!tpu.dma_semaphore, #tpu.memory_space<semaphore_mem>>
    tpu.wait_dma2 semaphore(%6 : memref<!tpu.dma_semaphore, #tpu.memory_space<semaphore_mem>>) src(%arg1 : memref<800x256xbf16, #tpu.memory_space<any>>) dst(%arg5 : memref<800x256xbf16, #tpu.memory_space<vmem>>)
    %c0_2 = arith.constant 0 : index
    %c0_3 = arith.constant 0 : index
    %7 = vector.load %arg5[%c0_2, %c0_3] : memref<800x256xbf16, #tpu.memory_space<vmem>>, vector<16x256xbf16>
    %cst = arith.constant dense<0.000000e+00> : vector<16x256xf32>
    %8 = tpu.matmul %4, %7, %cst {dimension_numbers = #tpu.dot_dimension_numbers<[1], [0], [0], [1], [0, 0, 1, 1], [], []>} : vector<16x16xbf16>, vector<16x256xbf16>, vector<16x256xf32> -> vector<16x256xf32>
    %c0_4 = arith.constant 0 : index
    %c0_5 = arith.constant 0 : index
    %9 = vector.load %arg3[%c0_4, %c0_5] : memref<8x256xf32, #tpu.memory_space<vmem>>, vector<1x256xf32>
    %10 = vector.broadcast %9 : vector<1x256xf32> to vector<16x256xf32>
    %11 = arith.addf %8, %10 : vector<16x256xf32>
    %cst_6 = arith.constant 0.000000e+00 : f32
    %12 = vector.broadcast %cst_6 : f32 to vector<16x256xf32>
    %13 = arith.maximumf %11, %12 : vector<16x256xf32>
    %c16 = arith.constant 16 : index
    %c0_7 = arith.constant 0 : index
    %14 = vector.load %arg5[%c16, %c0_7] : memref<800x256xbf16, #tpu.memory_space<vmem>>, vector<16x256xbf16>
    %cst_8 = arith.constant dense<0.000000e+00> : vector<16x256xf32>
    %15 = tpu.matmul %4, %14, %cst_8 {dimension_numbers = #tpu.dot_dimension_numbers<[1], [0], [0], [1], [0, 0, 1, 1], [], []>} : vector<16x16xbf16>, vector<16x256xbf16>, vector<16x256xf32> -> vector<16x256xf32>
    %16 = arith.truncf %13 : vector<16x256xf32> to vector<16x256xbf16>
    %c32 = arith.constant 32 : index
    %c0_9 = arith.constant 0 : index
    %17 = vector.load %arg5[%c32, %c0_9] : memref<800x256xbf16, #tpu.memory_space<vmem>>, vector<256x256xbf16>
    %cst_10 = arith.constant dense<0.000000e+00> : vector<16x256xf32>
    %18 = tpu.matmul %16, %17, %cst_10 {dimension_numbers = #tpu.dot_dimension_numbers<[1], [0], [0], [1], [0, 0, 1, 1], [], []>} : vector<16x256xbf16>, vector<256x256xbf16>, vector<16x256xf32> -> vector<16x256xf32>
    %c1 = arith.constant 1 : index
    %c0_11 = arith.constant 0 : index
    %19 = vector.load %arg3[%c1, %c0_11] : memref<8x256xf32, #tpu.memory_space<vmem>>, vector<1x256xf32>
    %20 = vector.broadcast %19 : vector<1x256xf32> to vector<16x256xf32>
    %21 = arith.addf %18, %20 : vector<16x256xf32>
    %cst_12 = arith.constant 0.000000e+00 : f32
    %22 = vector.broadcast %cst_12 : f32 to vector<16x256xf32>
    %23 = arith.maximumf %21, %22 : vector<16x256xf32>
    %24 = arith.truncf %23 : vector<16x256xf32> to vector<16x256xbf16>
    %c288 = arith.constant 288 : index
    %c0_13 = arith.constant 0 : index
    %25 = vector.load %arg5[%c288, %c0_13] : memref<800x256xbf16, #tpu.memory_space<vmem>>, vector<256x256xbf16>
    %cst_14 = arith.constant dense<0.000000e+00> : vector<16x256xf32>
    %26 = tpu.matmul %24, %25, %cst_14 {dimension_numbers = #tpu.dot_dimension_numbers<[1], [0], [0], [1], [0, 0, 1, 1], [], []>} : vector<16x256xbf16>, vector<256x256xbf16>, vector<16x256xf32> -> vector<16x256xf32>
    %c2 = arith.constant 2 : index
    %c0_15 = arith.constant 0 : index
    %27 = vector.load %arg3[%c2, %c0_15] : memref<8x256xf32, #tpu.memory_space<vmem>>, vector<1x256xf32>
    %28 = vector.broadcast %27 : vector<1x256xf32> to vector<16x256xf32>
    %29 = arith.addf %26, %28 : vector<16x256xf32>
    %cst_16 = arith.constant 0.000000e+00 : f32
    %30 = vector.broadcast %cst_16 : f32 to vector<16x256xf32>
    %31 = arith.maximumf %29, %30 : vector<16x256xf32>
    %32 = arith.truncf %31 : vector<16x256xf32> to vector<16x256xbf16>
    %c544 = arith.constant 544 : index
    %c0_17 = arith.constant 0 : index
    %33 = vector.load %arg5[%c544, %c0_17] : memref<800x256xbf16, #tpu.memory_space<vmem>>, vector<256x256xbf16>
    %cst_18 = arith.constant dense<0.000000e+00> : vector<16x256xf32>
    %34 = tpu.matmul %32, %33, %cst_18 {dimension_numbers = #tpu.dot_dimension_numbers<[1], [0], [0], [1], [0, 0, 1, 1], [], []>} : vector<16x256xbf16>, vector<256x256xbf16>, vector<16x256xf32> -> vector<16x256xf32>
    %c3 = arith.constant 3 : index
    %c0_19 = arith.constant 0 : index
    %35 = vector.load %arg3[%c3, %c0_19] : memref<8x256xf32, #tpu.memory_space<vmem>>, vector<1x256xf32>
    %36 = vector.broadcast %35 : vector<1x256xf32> to vector<16x256xf32>
    %37 = arith.addf %34, %36 : vector<16x256xf32>
    %cst_20 = arith.constant 0.000000e+00 : f32
    %38 = vector.broadcast %cst_20 : f32 to vector<16x256xf32>
    %39 = arith.maximumf %37, %38 : vector<16x256xf32>
    %c1_i32_21 = arith.constant 1 : i32
    %40 = tpu.memref_slice %arg7[%c1_i32_21] : memref<2x!tpu.dma_semaphore, #tpu.memory_space<semaphore_mem>> -> memref<1x!tpu.dma_semaphore, #tpu.memory_space<semaphore_mem>>
    %41 = tpu.memref_squeeze %40 : memref<1x!tpu.dma_semaphore, #tpu.memory_space<semaphore_mem>> -> memref<!tpu.dma_semaphore, #tpu.memory_space<semaphore_mem>>
    tpu.wait_dma2 semaphore(%41 : memref<!tpu.dma_semaphore, #tpu.memory_space<semaphore_mem>>) src(%arg2 : memref<1024x256xbf16, #tpu.memory_space<any>>) dst(%arg6 : memref<1024x256xbf16, #tpu.memory_space<vmem>>)
    %42 = arith.truncf %39 : vector<16x256xf32> to vector<16x256xbf16>
    %c0_22 = arith.constant 0 : index
    %c0_23 = arith.constant 0 : index
    %43 = vector.load %arg6[%c0_22, %c0_23] : memref<1024x256xbf16, #tpu.memory_space<vmem>>, vector<256x256xbf16>
    %cst_24 = arith.constant dense<0.000000e+00> : vector<16x256xf32>
    %44 = tpu.matmul %42, %43, %cst_24 {dimension_numbers = #tpu.dot_dimension_numbers<[1], [0], [0], [1], [0, 0, 1, 1], [], []>} : vector<16x256xbf16>, vector<256x256xbf16>, vector<16x256xf32> -> vector<16x256xf32>
    %45 = arith.addf %44, %15 : vector<16x256xf32>
    %c4 = arith.constant 4 : index
    %c0_25 = arith.constant 0 : index
    %46 = vector.load %arg3[%c4, %c0_25] : memref<8x256xf32, #tpu.memory_space<vmem>>, vector<1x256xf32>
    %47 = vector.broadcast %46 : vector<1x256xf32> to vector<16x256xf32>
    %48 = arith.addf %45, %47 : vector<16x256xf32>
    %cst_26 = arith.constant 0.000000e+00 : f32
    %49 = vector.broadcast %cst_26 : f32 to vector<16x256xf32>
    %50 = arith.maximumf %48, %49 : vector<16x256xf32>
    %51 = arith.truncf %50 : vector<16x256xf32> to vector<16x256xbf16>
    %c256 = arith.constant 256 : index
    %c0_27 = arith.constant 0 : index
    %52 = vector.load %arg6[%c256, %c0_27] : memref<1024x256xbf16, #tpu.memory_space<vmem>>, vector<256x256xbf16>
    %cst_28 = arith.constant dense<0.000000e+00> : vector<16x256xf32>
    %53 = tpu.matmul %51, %52, %cst_28 {dimension_numbers = #tpu.dot_dimension_numbers<[1], [0], [0], [1], [0, 0, 1, 1], [], []>} : vector<16x256xbf16>, vector<256x256xbf16>, vector<16x256xf32> -> vector<16x256xf32>
    %c5 = arith.constant 5 : index
    %c0_29 = arith.constant 0 : index
    %54 = vector.load %arg3[%c5, %c0_29] : memref<8x256xf32, #tpu.memory_space<vmem>>, vector<1x256xf32>
    %55 = vector.broadcast %54 : vector<1x256xf32> to vector<16x256xf32>
    %56 = arith.addf %53, %55 : vector<16x256xf32>
    %cst_30 = arith.constant 0.000000e+00 : f32
    %57 = vector.broadcast %cst_30 : f32 to vector<16x256xf32>
    %58 = arith.maximumf %56, %57 : vector<16x256xf32>
    %59 = arith.truncf %58 : vector<16x256xf32> to vector<16x256xbf16>
    %c512 = arith.constant 512 : index
    %c0_31 = arith.constant 0 : index
    %60 = vector.load %arg6[%c512, %c0_31] : memref<1024x256xbf16, #tpu.memory_space<vmem>>, vector<256x256xbf16>
    %cst_32 = arith.constant dense<0.000000e+00> : vector<16x256xf32>
    %61 = tpu.matmul %59, %60, %cst_32 {dimension_numbers = #tpu.dot_dimension_numbers<[1], [0], [0], [1], [0, 0, 1, 1], [], []>} : vector<16x256xbf16>, vector<256x256xbf16>, vector<16x256xf32> -> vector<16x256xf32>
    %c6 = arith.constant 6 : index
    %c0_33 = arith.constant 0 : index
    %62 = vector.load %arg3[%c6, %c0_33] : memref<8x256xf32, #tpu.memory_space<vmem>>, vector<1x256xf32>
    %63 = vector.broadcast %62 : vector<1x256xf32> to vector<16x256xf32>
    %64 = arith.addf %61, %63 : vector<16x256xf32>
    %cst_34 = arith.constant 0.000000e+00 : f32
    %65 = vector.broadcast %cst_34 : f32 to vector<16x256xf32>
    %66 = arith.maximumf %64, %65 : vector<16x256xf32>
    %67 = arith.truncf %66 : vector<16x256xf32> to vector<16x256xbf16>
    %c768 = arith.constant 768 : index
    %c0_35 = arith.constant 0 : index
    %68 = vector.load %arg6[%c768, %c0_35] : memref<1024x256xbf16, #tpu.memory_space<vmem>>, vector<256x256xbf16>
    %cst_36 = arith.constant dense<0.000000e+00> : vector<16x256xf32>
    %69 = tpu.matmul %67, %68, %cst_36 {dimension_numbers = #tpu.dot_dimension_numbers<[1], [0], [0], [1], [0, 0, 1, 1], [], []>} : vector<16x256xbf16>, vector<256x256xbf16>, vector<16x256xf32> -> vector<16x256xf32>
    %c7 = arith.constant 7 : index
    %c0_37 = arith.constant 0 : index
    %70 = vector.load %arg3[%c7, %c0_37] : memref<8x256xf32, #tpu.memory_space<vmem>>, vector<1x256xf32>
    %71 = vector.broadcast %70 : vector<1x256xf32> to vector<16x256xf32>
    %72 = arith.addf %69, %71 : vector<16x256xf32>
    %cst_38 = arith.constant 0.000000e+00 : f32
    %73 = vector.broadcast %cst_38 : f32 to vector<16x256xf32>
    %74 = arith.maximumf %72, %73 : vector<16x256xf32>
    %c0_39 = arith.constant 0 : index
    %c0_40 = arith.constant 0 : index
    %75 = vector.load %arg4[%c0_39, %c0_40] : memref<16x256xf32, #tpu.memory_space<vmem>>, vector<16x256xf32>
    tpu.vector_store %arg4[%c0_39, %c0_40], %74 {strides = array<i32>} : memref<16x256xf32, #tpu.memory_space<vmem>>, vector<16x256xf32>,
    return
  }
}

</mosaic_0001>

<bundles_post_ra>
// kernel: tpu_custom_call.1
= control target key start
LH: loop header
LB: loop body
LE: loop exit
PB: predicated region body
PF: predicated region fallthrough
CT: control target
= control target key end

     0   :  { %9 = vsyncpa [#allocation6], 0  ;;  %s1172_s0 = inlined_call_operand.hbm [shape: bf16[16,16], index: 0, kind: input, shape index: {}]   ;;  %s1173_s1 = inlined_call_operand.hbm [shape: bf16[800,256], index: 1, kind: input, shape index: {}]   ;;  %s1174_s2 = inlined_call_operand.hbm [shape: bf16[1024,256], index: 2, kind: input, shape index: {}]   ;;  %s1175_s3 = inlined_call_operand.hbm [shape: f32[8,256], index: 3, kind: input, shape index: {}]   ;;  %s1176_s4 = inlined_call_operand.hbm [shape: f32[16,256], index: 4, kind: output, shape index: {}]  }
   0x1   :  { %10 = vsyncpa [#allocation9], 0 }
   0x2   :  { %11 = vsyncpa [#allocation7], 0  ;;  %s1038_s15 = smov [#allocation5]   ;;  %s962_s19 = scalar_lea.hbm %s1172_s0, 128 }
   0x3   :  { %s17_s16 = sshll.u32 %s1038_s15, 4  ;;  %p963_p0 = scmp.ne.s32.totalorder %s1172_s0, %s962_s19  ;;  %s18_s16 = int_to_ptr.vmem [resolvable:$true] %s17_s16 }
   0x4   :  { %p966_p1 = scmp.lt.u32.totalorder %s962_s19, %s1172_s0 }
   0x6   :  { %p968_p2 = pnand %p966_p1, %p963_p0 }
   0x8   :  { %971 = shalt.err (!%p968_p2)
}
   0x9   :  { %s972_s24 = scalar_lea.vmem %s18_s16, 128  ;;  %p977_p4 = scmp.lt.s32.totalorder %s18_s16, %s18_s16 }
   0xa   :  { %p973_p3 = scmp.ne.s32.totalorder %s18_s16, %s972_s24  ;;  %p978_p5 = scmp.lt.s32.totalorder %s972_s24, %s972_s24 }
   0xc   :  { %p979_p6 = por %p978_p5, %p977_p4 }
   0xe   :  { %p980_p7 = pnand %p979_p6, %p973_p3 }
  0x10   :  { %983 = shalt.err (!%p980_p7)
}
  0x11   :  { %s1039_s25 = smov 64   ;;  %s1040_s26 = smov 4  }
  0x12   :  { %23 = dma.hbm_to_vmem [thread:$0]  %s1172_s0, 128, %s18_s16, [#allocation6], %s1039_s25, %s1039_s25, %s1040_s26  }
  0x13   :  { %s1041_s29 = smov [#allocation8]   ;;  %s984_s7 = scalar_lea.hbm %s1175_s3, 256 }
  0x14   :  { %s30_s30 = sshll.u32 %s1041_s29, 4  ;;  %p985_p8 = scmp.ne.s32.totalorder %s1175_s3, %s984_s7  ;;  %s31_s30 = int_to_ptr.vmem [resolvable:$true] %s30_s30 }
  0x15   :  { %p988_p9 = scmp.lt.u32.totalorder %s984_s7, %s1175_s3 }
  0x17   :  { %p990_p10 = pnand %p988_p9, %p985_p8 }
  0x19   :  { %993 = shalt.err (!%p990_p10)
}
  0x1a   :  { %s994_s12 = scalar_lea.vmem %s31_s30, 256  ;;  %p999_p12 = scmp.lt.s32.totalorder %s31_s30, %s31_s30 }
  0x1b   :  { %p995_p11 = scmp.ne.s32.totalorder %s31_s30, %s994_s12  ;;  %p1000_p13 = scmp.lt.s32.totalorder %s994_s12, %s994_s12 }
  0x1d   :  { %p1001_p0 = por %p1000_p13, %p999_p12 }
  0x1f   :  { %p1002_p1 = pnand %p1001_p0, %p995_p11 }
  0x21   :  { %1005 = shalt.err (!%p1002_p1)
}
  0x22   :  { %33 = dma.hbm_to_vmem [thread:$0]  %s1175_s3, 256, %s31_s30, [#allocation9]  }
  0x23   :  { %1028 = dma.done.wait [#allocation6], 128  }
  0x24   :  { %1029 = vsyncadd [#allocation6], 4294967168 }
  0x25   :  { %1030 = dma.done.wait [#allocation9], 256  }
  0x26   :  { %1031 = vsyncadd [#allocation9], 4294967040  ;;  %s45_s14 = sld [smem:[#allocation0]]   ;;  %63 = sst [smem:[#allocation12 + $0x3]] %s1039_s25 }
  0x27   :  { %71 = sst [smem:[#allocation12 + $0x7]] %s1039_s25  ;;  %s1042_s15 = smov [#allocation2]  }
  0x28   :  { %s53_s16 = sshll.u32 %s1042_s15, 4  ;;  %73 = sst [smem:[#allocation12 + $0x8]] %s1040_s26  ;;  %s54_s16 = int_to_ptr.vmem [resolvable:$true] %s53_s16 }
  0x29   :  { %s1043_s17 = smov 256   ;;  %s1044_s3 = smov 2  }
  0x2a   :  { %57 = sst [smem:[#allocation12]] %s1043_s17  ;;  %s1045_s19 = smov 128  }
  0x2b   :  { %59 = sst [smem:[#allocation12 + $0x1]] %s1043_s17  ;;  %s1046_s21 = smov [#allocation4]  }
  0x2c   :  { %61 = sst [smem:[#allocation12 + $0x2]] %s1044_s3  ;;  %s933_s18 = sshll.u32 %s45_s14, 26 }
  0x2d   :  { %65 = sst [smem:[#allocation12 + $0x4]] %s1045_s19  ;;  %s934_s20 = sadd.s32 134217728, %s933_s18 }
  0x2e   :  { %67 = sst [smem:[#allocation12 + $0x5]] %s1044_s3  ;;  %s1047_s22 = smov [#allocation11]  }
  0x2f   :  { %69 = sst [smem:[#allocation12 + $0x6]] %s1045_s19  ;;  %s1048_s27 = smov [#allocation3]  }
  0x30   :  { %75 = dma.general %s1173_s1, 12800, %s54_s16, %s1046_s21, %s1047_s22, [#allocation12], %s934_s20, 0  }
  0x31   :  { %92 = sst [smem:[#allocation14]] %s1043_s17  ;;  %s88_s28 = sshll.u32 %s1048_s27, 4  ;;  %s89_s28 = int_to_ptr.vmem [resolvable:$true] %s88_s28 }
  0x32   :  { %94 = sst [smem:[#allocation14 + $0x1]] %s1043_s17  ;;  %s1049_s29 = smov [#allocation4 + $0x1]  }
  0x33   :  { %96 = sst [smem:[#allocation14 + $0x2]] %s1044_s3  ;;  %s1050_s30 = smov [#allocation13]  }
  0x34   :  { %98 = sst [smem:[#allocation14 + $0x3]] %s1039_s25 }
  0x35   :  { %100 = sst [smem:[#allocation14 + $0x4]] %s1045_s19 }
  0x36   :  { %102 = sst [smem:[#allocation14 + $0x5]] %s1044_s3 }
  0x37   :  { %104 = sst [smem:[#allocation14 + $0x6]] %s1045_s19 }
  0x38   :  { %106 = sst [smem:[#allocation14 + $0x7]] %s1039_s25 }
  0x39   :  { %108 = sst [smem:[#allocation14 + $0x8]] %s1040_s26 }
  0x3a   :  { %110 = dma.general %s1174_s2, 16384, %s89_s28, %s1049_s29, %s1050_s30, [#allocation14], %s934_s20, 0  }
  0x3b   :  { %v111_v0 = vld [vmem:[#allocation5] sm:$0xf]  ;;  %v112_v1 = vld [vmem:[#allocation5 + $0x4] sm:$0xf] }
  0x3c   :  { %1032 = dma.done.wait [#allocation4], 12800 }
  0x3d   :  { %1033 = vsyncadd [#allocation4], 4294954496  ;;  %v1051_v2 = vmov 0   ;;  %v118_v3 = vld [vmem:[#allocation2 + $0x8] sm:$0xff]  ;;  %v117_v4 = vld [vmem:[#allocation2] sm:$0xff]  ;;  %v1122_v6 = vcombine.low %v111_v0, %v112_v1  ;;  %vm136_vm0 = vcmask 130048  }
  0x3e   :  { %172 = vmatprep.mubr.bf16.mxu1 %v1051_v2  ;;  %v235_v5 = vld [vmem:[#allocation2 + $0x28] sm:$0xff]  ;;  %140 = vmatprep.subr.bf16.mxu1 %v118_v3  ;;  %v234_v7 = vld [vmem:[#allocation2 + $0x20] sm:$0xff]  ;;  %v237_v8 = vld [vmem:[#allocation2 + $0x38] sm:$0xff]  ;;  %v121_v3 = vlaneseq }
  0x3f   :  { %279 = vmatprep.subr.bf16.mxu0 %v235_v5  ;;  %141 = vmatpush1.bf16.msra.mxu1 %v117_v4  ;;  %v236_v9 = vld [vmem:[#allocation2 + $0x30] sm:$0xff]  ;;  %v239_v10 = vld [vmem:[#allocation2 + $0x48] sm:$0xff]  ;;  %v238_v11 = vld [vmem:[#allocation2 + $0x40] sm:$0xff] }
  0x40   :  { %280 = vmatpush1.bf16.msra.mxu0 %v234_v7  ;;  %v241_v12 = vld [vmem:[#allocation2 + $0x58] sm:$0xff]  ;;  %v240_v13 = vld [vmem:[#allocation2 + $0x50] sm:$0xff]  ;;  %v243_v14 = vld [vmem:[#allocation2 + $0x68] sm:$0xff]  ;;  %v122_v4 = vshrl.u32 %v121_v3, 7 }
  0x41   :  { %281 = vmatprep.subr.bf16.mxu0 %v237_v8  ;;  %v242_v15 = vld [vmem:[#allocation2 + $0x60] sm:$0xff]  ;;  %v245_v16 = vld [vmem:[#allocation2 + $0x78] sm:$0xff]  ;;  %v244_v17 = vld [vmem:[#allocation2 + $0x70] sm:$0xff] }
  0x42   :  { %938 = vmatmul.mubr.msk.bf16.vlgmr.msra.gmra.mrb[0].mxu1 %vm136_vm0, %v1122_v6  ;;  %v247_v18 = vld [vmem:[#allocation2 + $0x88] sm:$0xff]  ;;  %v246_v19 = vld [vmem:[#allocation2 + $0x80] sm:$0xff]  ;;  %v249_v20 = vld [vmem:[#allocation2 + $0x98] sm:$0xff]  ;;  %v1128_v5 = vsub.s32 0, %v122_v4  ;;  %v1130_v7 = vsub.s32 1, %v122_v4 }
  0x43   :  { %221 = vmatprep.mubr.bf16.mxu1 %v1051_v2  ;;  %v248_v21 = vld [vmem:[#allocation2 + $0x90] sm:$0xff]  ;;  %v251_v22 = vld [vmem:[#allocation2 + $0xa8] sm:$0xff]  ;;  %v250_v23 = vld [vmem:[#allocation2 + $0xa0] sm:$0xff] }
  0x44   :  { %282 = vmatpush1.bf16.msra.mxu0 %v236_v9  ;;  %v253_v24 = vld [vmem:[#allocation2 + $0xb8] sm:$0xff]  ;;  %v252_v25 = vld [vmem:[#allocation2 + $0xb0] sm:$0xff]  ;;  %v255_v26 = vld [vmem:[#allocation2 + $0xc8] sm:$0xff] }
  0x45   :  { %283 = vmatprep.subr.bf16.mxu0 %v239_v10  ;;  %v254_v27 = vld [vmem:[#allocation2 + $0xc0] sm:$0xff]  ;;  %v257_v28 = vld [vmem:[#allocation2 + $0xd8] sm:$0xff]  ;;  %v256_v29 = vld [vmem:[#allocation2 + $0xd0] sm:$0xff] }
  0x46   :  { %v259_v30 = vld [vmem:[#allocation2 + $0xe8] sm:$0xff]  ;;  %v258_v31 = vld [vmem:[#allocation2 + $0xe0] sm:$0xff]  ;;  %v261_v32 = vld [vmem:[#allocation2 + $0xf8] sm:$0xff] }
  0x47   :  { %v260_v33 = vld [vmem:[#allocation2 + $0xf0] sm:$0xff]  ;;  %v263_v34 = vld [vmem:[#allocation2 + $0x108] sm:$0xff]  ;;  %v262_v35 = vld [vmem:[#allocation2 + $0x100] sm:$0xff] }
  0x48   :  { %284 = vmatpush1.bf16.msra.mxu0 %v238_v11  ;;  %v265_v36 = vld [vmem:[#allocation2 + $0x118] sm:$0xff]  ;;  %v264_v37 = vld [vmem:[#allocation2 + $0x110] sm:$0xff]  ;;  %v329_v40 = vld [vmem:[#allocation2 + $0x128] sm:$0xff] }
  0x49   :  { %285 = vmatprep.subr.bf16.mxu0 %v241_v12  ;;  %v188_v38 = vld [vmem:[#allocation2 + $0x18] sm:$0xff]  ;;  %v187_v39 = vld [vmem:[#allocation2 + $0x10] sm:$0xff]  ;;  %v328_v41 = vld [vmem:[#allocation2 + $0x120] sm:$0xff] }
  0x4a   :  { %189 = vmatprep.subr.bf16.mxu1 %v188_v38  ;;  %v331_v42 = vld [vmem:[#allocation2 + $0x138] sm:$0xff]  ;;  %v330_v43 = vld [vmem:[#allocation2 + $0x130] sm:$0xff]  ;;  %v333_v44 = vld [vmem:[#allocation2 + $0x148] sm:$0xff] }
  0x4b   :  { %190 = vmatpush1.bf16.msra.mxu1 %v187_v39  ;;  %v332_v45 = vld [vmem:[#allocation2 + $0x140] sm:$0xff]  ;;  %v335_v46 = vld [vmem:[#allocation2 + $0x158] sm:$0xff]  ;;  %v334_v47 = vld [vmem:[#allocation2 + $0x150] sm:$0xff] }
  0x4c   :  { %286 = vmatpush1.bf16.msra.mxu0 %v240_v13  ;;  %373 = vmatprep.subr.bf16.mxu1 %v329_v40  ;;  %v337_v48 = vld [vmem:[#allocation2 + $0x168] sm:$0xff]  ;;  %v336_v49 = vld [vmem:[#allocation2 + $0x160] sm:$0xff]  ;;  %v339_v50 = vld [vmem:[#allocation2 + $0x178] sm:$0xff] }
  0x4d   :  { %287 = vmatprep.subr.bf16.mxu0 %v243_v14  ;;  %v338_v51 = vld [vmem:[#allocation2 + $0x170] sm:$0xff]  ;;  %v341_v52 = vld [vmem:[#allocation2 + $0x188] sm:$0xff]  ;;  %v340_v53 = vld [vmem:[#allocation2 + $0x180] sm:$0xff] }
  0x4e   :  { %939 = vmatmul.mubr.msk.bf16.vlgmr.msra.gmra.mrb[4].mxu1 %vm136_vm0, %v1122_v6  ;;  %v343_v54 = vld [vmem:[#allocation2 + $0x198] sm:$0xff]  ;;  %v342_v55 = vld [vmem:[#allocation2 + $0x190] sm:$0xff]  ;;  %v345_v56 = vld [vmem:[#allocation2 + $0x1a8] sm:$0xff] }
  0x4f   :  { %374 = vmatpush1.bf16.msra.mxu1 %v328_v41  ;;  %v344_v57 = vld [vmem:[#allocation2 + $0x1a0] sm:$0xff]  ;;  %v347_v58 = vld [vmem:[#allocation2 + $0x1b8] sm:$0xff]  ;;  %v346_v59 = vld [vmem:[#allocation2 + $0x1b0] sm:$0xff] }
  0x50   :  { %288 = vmatpush1.bf16.msra.mxu0 %v242_v15  ;;  %375 = vmatprep.subr.bf16.mxu1 %v331_v42  ;;  %v349_v60 = vld [vmem:[#allocation2 + $0x1c8] sm:$0xff]  ;;  %v348_v61 = vld [vmem:[#allocation2 + $0x1c0] sm:$0xff]  ;;  %v351_v62 = vld [vmem:[#allocation2 + $0x1d8] sm:$0xff] }
  0x51   :  { %289 = vmatprep.subr.bf16.mxu0 %v245_v16  ;;  %v350_v63 = vld [vmem:[#allocation2 + $0x1d0] sm:$0xff]  ;;  %v353_v0 = vld [vmem:[#allocation2 + $0x1e8] sm:$0xff]  ;;  %v352_v1 = vld [vmem:[#allocation2 + $0x1e0] sm:$0xff] }
  0x52   :  { %v355_v2 = vld [vmem:[#allocation2 + $0x1f8] sm:$0xff]  ;;  %v119_v6 = vld [vmem:[#allocation8] ss:$8 sm:$0x3]  ;;  %v430_v38 = vld [vmem:[#allocation2 + $0x260] sm:$0xff] }
  0x53   :  { %376 = vmatpush1.bf16.msra.mxu1 %v330_v43  ;;  %v124_v8 = vrot.slane %v119_v6, %v1128_v5  ;;  %v128_v9 = vrot.slane %v119_v6, %v1130_v7  ;;  %v433_v39 = vld [vmem:[#allocation2 + $0x278] sm:$0xff]  ;;  %v432_v40 = vld [vmem:[#allocation2 + $0x270] sm:$0xff]  ;;  %v435_v41 = vld [vmem:[#allocation2 + $0x288] sm:$0xff] }
  0x54   :  { %290 = vmatpush1.bf16.msra.mxu0 %v244_v17  ;;  %377 = vmatprep.subr.bf16.mxu1 %v333_v44  ;;  %v434_v42 = vld [vmem:[#allocation2 + $0x280] sm:$0xff]  ;;  %v437_v43 = vld [vmem:[#allocation2 + $0x298] sm:$0xff]  ;;  %v436_v44 = vld [vmem:[#allocation2 + $0x290] sm:$0xff] }
  0x55   :  { %291 = vmatprep.subr.bf16.mxu0 %v247_v18 }
  0x57   :  { %378 = vmatpush1.bf16.msra.mxu1 %v332_v45  ;;  %v439_v45 = vld [vmem:[#allocation2 + $0x2a8] sm:$0xff] }
  0x58   :  { %292 = vmatpush1.bf16.msra.mxu0 %v246_v19  ;;  %379 = vmatprep.subr.bf16.mxu1 %v335_v46  ;;  %v438_v46 = vld [vmem:[#allocation2 + $0x2a0] sm:$0xff] }
  0x59   :  { %293 = vmatprep.subr.bf16.mxu0 %v249_v20 }
  0x5b   :  { %380 = vmatpush1.bf16.msra.mxu1 %v334_v47  ;;  %v441_v47 = vld [vmem:[#allocation2 + $0x2b8] sm:$0xff] }
  0x5c   :  { %294 = vmatpush1.bf16.msra.mxu0 %v248_v21  ;;  %381 = vmatprep.subr.bf16.mxu1 %v337_v48  ;;  %v440_v48 = vld [vmem:[#allocation2 + $0x2b0] sm:$0xff] }
  0x5d   :  { %295 = vmatprep.subr.bf16.mxu0 %v251_v22 }
  0x5f   :  { %382 = vmatpush1.bf16.msra.mxu1 %v336_v49  ;;  %v443_v49 = vld [vmem:[#allocation2 + $0x2c8] sm:$0xff] }
  0x60   :  { %296 = vmatpush1.bf16.msra.mxu0 %v250_v23  ;;  %383 = vmatprep.subr.bf16.mxu1 %v339_v50  ;;  %v442_v50 = vld [vmem:[#allocation2 + $0x2c0] sm:$0xff] }
  0x61   :  { %297 = vmatprep.subr.bf16.mxu0 %v253_v24  ;;  %v354_v24 = vld [vmem:[#allocation2 + $0x1f0] sm:$0xff] }
  0x63   :  { %384 = vmatpush1.bf16.msra.mxu1 %v338_v51  ;;  %v445_v51 = vld [vmem:[#allocation2 + $0x2d8] sm:$0xff] }
  0x64   :  { %298 = vmatpush1.bf16.msra.mxu0 %v252_v25  ;;  %385 = vmatprep.subr.bf16.mxu1 %v341_v52  ;;  %v357_v25 = vld [vmem:[#allocation2 + $0x208] sm:$0xff]  ;;  %v444_v52 = vld [vmem:[#allocation2 + $0x2d0] sm:$0xff] }
  0x65   :  { %299 = vmatprep.subr.bf16.mxu0 %v255_v26  ;;  %v356_v26 = vld [vmem:[#allocation2 + $0x200] sm:$0xff] }
  0x67   :  { %386 = vmatpush1.bf16.msra.mxu1 %v340_v53  ;;  %v447_v53 = vld [vmem:[#allocation2 + $0x2e8] sm:$0xff] }
  0x68   :  { %300 = vmatpush1.bf16.msra.mxu0 %v254_v27  ;;  %387 = vmatprep.subr.bf16.mxu1 %v343_v54  ;;  %v359_v27 = vld [vmem:[#allocation2 + $0x218] sm:$0xff]  ;;  %v446_v54 = vld [vmem:[#allocation2 + $0x2e0] sm:$0xff] }
  0x69   :  { %301 = vmatprep.subr.bf16.mxu0 %v257_v28  ;;  %v358_v28 = vld [vmem:[#allocation2 + $0x210] sm:$0xff] }
  0x6b   :  { %388 = vmatpush1.bf16.msra.mxu1 %v342_v55  ;;  %v449_v55 = vld [vmem:[#allocation2 + $0x2f8] sm:$0xff] }
  0x6c   :  { %302 = vmatpush1.bf16.msra.mxu0 %v256_v29  ;;  %389 = vmatprep.subr.bf16.mxu1 %v345_v56  ;;  %v423_v29 = vld [vmem:[#allocation2 + $0x228] sm:$0xff] }
  0x6d   :  { %303 = vmatprep.subr.bf16.mxu0 %v259_v30  ;;  %v422_v30 = vld [vmem:[#allocation2 + $0x220] sm:$0xff]  ;;  %v267_v56 = vld [vmem:[#allocation8 + $0x1] ss:$8 sm:$0x3] }
  0x6f   :  { %390 = vmatpush1.bf16.msra.mxu1 %v344_v57  ;;  %v272_v57 = vrot.slane %v267_v56, %v1128_v5 }
  0x70   :  { %304 = vmatpush1.bf16.msra.mxu0 %v258_v31  ;;  %391 = vmatprep.subr.bf16.mxu1 %v347_v58  ;;  %v425_v31 = vld [vmem:[#allocation2 + $0x238] sm:$0xff]  ;;  %v276_v58 = vrot.slane %v267_v56, %v1130_v7 }
  0x71   :  { %305 = vmatprep.subr.bf16.mxu0 %v261_v32  ;;  %v424_v32 = vld [vmem:[#allocation2 + $0x230] sm:$0xff] }
  0x73   :  { %392 = vmatpush1.bf16.msra.mxu1 %v346_v59 }
  0x74   :  { %306 = vmatpush1.bf16.msra.mxu0 %v260_v33  ;;  %393 = vmatprep.subr.bf16.mxu1 %v349_v60  ;;  %v427_v33 = vld [vmem:[#allocation2 + $0x248] sm:$0xff] }
  0x75   :  { %307 = vmatprep.subr.bf16.mxu0 %v263_v34  ;;  %v426_v34 = vld [vmem:[#allocation2 + $0x240] sm:$0xff] }
  0x77   :  { %394 = vmatpush1.bf16.msra.mxu1 %v348_v61 }
  0x78   :  { %308 = vmatpush1.bf16.msra.mxu0 %v262_v35  ;;  %395 = vmatprep.subr.bf16.mxu1 %v351_v62  ;;  %v429_v35 = vld [vmem:[#allocation2 + $0x258] sm:$0xff] }
  0x79   :  { %309 = vmatprep.subr.bf16.mxu0 %v265_v36  ;;  %v428_v36 = vld [vmem:[#allocation2 + $0x250] sm:$0xff] }
  0x7b   :  { %396 = vmatpush1.bf16.msra.mxu1 %v350_v63 }
  0x7c   :  { %310 = vmatpush1.bf16.msra.mxu0 %v264_v37  ;;  %397 = vmatprep.subr.bf16.mxu1 %v353_v0  ;;  %v431_v37 = vld [vmem:[#allocation2 + $0x268] sm:$0xff] }
  0x7d   :  { %467 = vmatprep.subr.bf16.mxu0 %v423_v29 }
  0x7f   :  { %398 = vmatpush1.bf16.msra.mxu1 %v352_v1 }
  0x80   :  { %399 = vmatprep.subr.bf16.mxu1 %v355_v2 }
  0x83   :  { %400 = vmatpush1.bf16.msra.mxu1 %v354_v24 }
  0x84   :  { %401 = vmatprep.subr.bf16.mxu1 %v357_v25 }
  0x87   :  { %402 = vmatpush1.bf16.msra.mxu1 %v356_v26 }
  0x88   :  { %403 = vmatprep.subr.bf16.mxu1 %v359_v27 }
  0x8b   :  { %404 = vmatpush1.bf16.msra.mxu1 %v358_v28 }
 0x115   :  { %v174_v10 = vpop.f32.mrb[0].mxu1 }
 0x116   :  { %v175_v11 = vadd.f32 %v174_v10, %v124_v8  ;;  %v176_v12 = vpop.f32.mrb[1].mxu1 }
 0x117   :  { %v177_v13 = vadd.f32 %v176_v12, %v128_v9  ;;  %v178_v14 = vpop.f32.mrb[2].mxu1  ;;  %v451_v12 = vld [vmem:[#allocation2 + $0x308] sm:$0xff] }
 0x118   :  { %v179_v15 = vadd.f32 %v178_v14, %v124_v8  ;;  %v180_v16 = vpop.f32.mrb[3].mxu1  ;;  %v183_v18 = vmax.f32 %v175_v11, 0.0  ;;  %v448_v11 = vld [vmem:[#allocation2 + $0x2f0] sm:$0xff]  ;;  %v453_v14 = vld [vmem:[#allocation2 + $0x318] sm:$0xff] }
 0x119   :  { %v181_v17 = vadd.f32 %v180_v16, %v128_v9  ;;  %v184_v20 = vmax.f32 %v177_v13, 0.0  ;;  %v450_v13 = vld [vmem:[#allocation2 + $0x300] sm:$0xff]  ;;  %v361_v16 = vld [vmem:[#allocation8 + $0x2] ss:$8 sm:$0x3] }
 0x11a   :  { %v185_v19 = vmax.f32 %v179_v15, 0.0  ;;  %v452_v15 = vld [vmem:[#allocation2 + $0x310] sm:$0xff] }
 0x11b   :  { %v186_v21 = vmax.f32 %v181_v17, 0.0  ;;  %v366_v17 = vrot.slane %v361_v16, %v1128_v5 }
 0x11c   :  { %v232_v22 = vpack.c.bf16 %v185_v19, %v183_v18  ;;  %v370_v18 = vrot.slane %v361_v16, %v1130_v7 }
 0x11d   :  { %v233_v23 = vpack.c.bf16 %v186_v21, %v184_v20 }
 0x11f   :  { %311 = vmatprep.mubr.bf16.mxu0 %v233_v23 }
 0x120   :  { %312 = vmatmul.mubr.bf16.vlgmr.msra.gmra.mrb[0].mxu0 %v232_v22 }
 0x121   :  { %468 = vmatpush1.bf16.msra.mxu0 %v422_v30 }
 0x122   :  { %469 = vmatprep.subr.bf16.mxu0 %v425_v31 }
 0x125   :  { %470 = vmatpush1.bf16.msra.mxu0 %v424_v32 }
 0x126   :  { %471 = vmatprep.subr.bf16.mxu0 %v427_v33  ;;  %v455_v33 = vld [vmem:[#allocation8 + $0x3] ss:$8 sm:$0x3] }
 0x129   :  { %472 = vmatpush1.bf16.msra.mxu0 %v426_v34  ;;  %v460_v34 = vrot.slane %v455_v33, %v1128_v5 }
 0x12a   :  { %473 = vmatprep.subr.bf16.mxu0 %v429_v35  ;;  %v464_v35 = vrot.slane %v455_v33, %v1130_v7 }
 0x12d   :  { %474 = vmatpush1.bf16.msra.mxu0 %v428_v36 }
 0x12e   :  { %475 = vmatprep.subr.bf16.mxu0 %v431_v37 }
 0x131   :  { %476 = vmatpush1.bf16.msra.mxu0 %v430_v38 }
 0x132   :  { %477 = vmatprep.subr.bf16.mxu0 %v433_v39 }
 0x135   :  { %478 = vmatpush1.bf16.msra.mxu0 %v432_v40 }
 0x136   :  { %479 = vmatprep.subr.bf16.mxu0 %v435_v41 }
 0x139   :  { %480 = vmatpush1.bf16.msra.mxu0 %v434_v42 }
 0x13a   :  { %481 = vmatprep.subr.bf16.mxu0 %v437_v43 }
 0x13d   :  { %482 = vmatpush1.bf16.msra.mxu0 %v436_v44 }
 0x13e   :  { %483 = vmatprep.subr.bf16.mxu0 %v439_v45 }
 0x141   :  { %484 = vmatpush1.bf16.msra.mxu0 %v438_v46 }
 0x142   :  { %485 = vmatprep.subr.bf16.mxu0 %v441_v47 }
 0x145   :  { %486 = vmatpush1.bf16.msra.mxu0 %v440_v48 }
 0x146   :  { %487 = vmatprep.subr.bf16.mxu0 %v443_v49 }
 0x149   :  { %488 = vmatpush1.bf16.msra.mxu0 %v442_v50 }
 0x14a   :  { %489 = vmatprep.subr.bf16.mxu0 %v445_v51 }
 0x14d   :  { %490 = vmatpush1.bf16.msra.mxu0 %v444_v52 }
 0x14e   :  { %491 = vmatprep.subr.bf16.mxu0 %v447_v53 }
 0x151   :  { %492 = vmatpush1.bf16.msra.mxu0 %v446_v54 }
 0x152   :  { %493 = vmatprep.subr.bf16.mxu0 %v449_v55 }
 0x155   :  { %494 = vmatpush1.bf16.msra.mxu0 %v448_v11 }
 0x156   :  { %495 = vmatprep.subr.bf16.mxu0 %v451_v12 }
 0x159   :  { %496 = vmatpush1.bf16.msra.mxu0 %v450_v13 }
 0x15a   :  { %497 = vmatprep.subr.bf16.mxu0 %v453_v14 }
 0x15d   :  { %498 = vmatpush1.bf16.msra.mxu0 %v452_v15 }
 0x1f3   :  { %v313_v59 = vpop.f32.mrb[0].mxu0 }
 0x1f4   :  { %v314_v60 = vadd.f32 %v313_v59, %v272_v57  ;;  %v315_v61 = vpop.f32.mrb[1].mxu0 }
 0x1f5   :  { %v316_v62 = vadd.f32 %v315_v61, %v276_v58  ;;  %v317_v63 = vpop.f32.mrb[2].mxu0 }
 0x1f6   :  { %v318_v0 = vadd.f32 %v317_v63, %v272_v57  ;;  %v319_v1 = vpop.f32.mrb[3].mxu0  ;;  %v322_v3 = vmax.f32 %v314_v60, 0.0 }
 0x1f7   :  { %v320_v2 = vadd.f32 %v319_v1, %v276_v58  ;;  %v323_v6 = vmax.f32 %v316_v62, 0.0 }
 0x1f8   :  { %v324_v4 = vmax.f32 %v318_v0, 0.0 }
 0x1f9   :  { %v325_v8 = vmax.f32 %v320_v2, 0.0 }
 0x1fa   :  { %v326_v9 = vpack.c.bf16 %v324_v4, %v322_v3 }
 0x1fb   :  { %v327_v10 = vpack.c.bf16 %v325_v8, %v323_v6 }
 0x1fd   :  { %405 = vmatprep.mubr.bf16.mxu1 %v327_v10 }
 0x1fe   :  { %406 = vmatmul.mubr.bf16.vlgmr.msra.gmra.mrb[8].mxu1 %v326_v9 }
 0x2d1   :  { %v407_v19 = vpop.f32.mrb[8].mxu1 }
 0x2d2   :  { %v408_v20 = vadd.f32 %v407_v19, %v366_v17  ;;  %v409_v21 = vpop.f32.mrb[9].mxu1 }
 0x2d3   :  { %v410_v22 = vadd.f32 %v409_v21, %v370_v18  ;;  %v411_v23 = vpop.f32.mrb[10].mxu1 }
 0x2d4   :  { %v412_v24 = vadd.f32 %v411_v23, %v366_v17  ;;  %v413_v25 = vpop.f32.mrb[11].mxu1  ;;  %v416_v27 = vmax.f32 %v408_v20, 0.0 }
 0x2d5   :  { %v414_v26 = vadd.f32 %v413_v25, %v370_v18  ;;  %v417_v29 = vmax.f32 %v410_v22, 0.0 }
 0x2d6   :  { %v418_v28 = vmax.f32 %v412_v24, 0.0 }
 0x2d7   :  { %v419_v30 = vmax.f32 %v414_v26, 0.0 }
 0x2d8   :  { %v420_v31 = vpack.c.bf16 %v418_v28, %v416_v27 }
 0x2d9   :  { %v421_v32 = vpack.c.bf16 %v419_v30, %v417_v29 }
 0x2db   :  { %499 = vmatprep.mubr.bf16.mxu0 %v421_v32 }
 0x2dc   :  { %500 = vmatmul.mubr.bf16.vlgmr.msra.gmra.mrb[4].mxu0 %v420_v31 }
 0x3af   :  { %v501_v36 = vpop.f32.mrb[4].mxu0 }
 0x3b0   :  { %v1140_v37 = vadd.f32 %v501_v36, %v460_v34  ;;  %v503_v38 = vpop.f32.mrb[5].mxu0 }
 0x3b1   :  { %v504_v39 = vadd.f32 %v503_v38, %v464_v35  ;;  %v505_v40 = vpop.f32.mrb[6].mxu0 }
 0x3b2   :  { %v510_v41 = vmax.f32 %v1140_v37, 0.0  ;;  %v1143_v42 = vadd.f32 %v505_v40, %v460_v34  ;;  %v507_v43 = vpop.f32.mrb[7].mxu0 }
 0x3b3   :  { %v511_v44 = vmax.f32 %v504_v39, 0.0  ;;  %v508_v45 = vadd.f32 %v507_v43, %v464_v35 }
 0x3b4   :  { %v512_v46 = vmax.f32 %v1143_v42, 0.0 }
 0x3b5   :  { %v513_v47 = vmax.f32 %v508_v45, 0.0 }
 0x3b6   :  { %1034 = dma.done.wait [#allocation4 + $0x1], 16384 }
 0x3b7   :  { %1035 = vsyncadd [#allocation4 + $0x1], 4294950912  ;;  %v519_v48 = vpack.c.bf16 %v513_v47, %v511_v44  ;;  %v521_v49 = vld [vmem:[#allocation3 + $0x8] sm:$0xff]  ;;  %v520_v50 = vld [vmem:[#allocation3] sm:$0xff]  ;;  %s1052_s2 = smov [#allocation10]  }
 0x3b8   :  { %v523_v51 = vld [vmem:[#allocation3 + $0x18] sm:$0xff]  ;;  %552 = vmatprep.subr.bf16.mxu1 %v521_v49  ;;  %v522_v52 = vld [vmem:[#allocation3 + $0x10] sm:$0xff]  ;;  %v525_v53 = vld [vmem:[#allocation3 + $0x28] sm:$0xff]  ;;  %s907_s25 = sshll.u32 %s1052_s2, 4  ;;  %s908_s25 = int_to_ptr.vmem [resolvable:$true] %s907_s25 }
 0x3b9   :  { %584 = vmatprep.mubr.bf16.mxu1 %v519_v48  ;;  %553 = vmatpush1.bf16.msra.mxu1 %v520_v50  ;;  %v524_v54 = vld [vmem:[#allocation3 + $0x20] sm:$0xff]  ;;  %v527_v55 = vld [vmem:[#allocation3 + $0x38] sm:$0xff]  ;;  %v619_v56 = vld [vmem:[#allocation3 + $0x108] sm:$0xff]  ;;  %v518_v50 = vpack.c.bf16 %v512_v46, %v510_v41  ;;  %s1006_s26 = scalar_lea.vmem %s908_s25, 512  ;;  %p1011_p3 = scmp.lt.s32.totalorder %s908_s25, %s908_s25 }
 0x3ba   :  { %554 = vmatprep.subr.bf16.mxu1 %v523_v51  ;;  %v526_v57 = vld [vmem:[#allocation3 + $0x30] sm:$0xff]  ;;  %663 = vmatprep.subr.bf16.mxu0 %v619_v56  ;;  %v618_v58 = vld [vmem:[#allocation3 + $0x100] sm:$0xff]  ;;  %v621_v59 = vld [vmem:[#allocation3 + $0x118] sm:$0xff]  ;;  %p1007_p2 = scmp.ne.s32.totalorder %s908_s25, %s1006_s26  ;;  %p1012_p4 = scmp.lt.s32.totalorder %s1006_s26, %s1006_s26 }
 0x3bb   :  { %v529_v60 = vld [vmem:[#allocation3 + $0x48] sm:$0xff]  ;;  %664 = vmatpush1.bf16.msra.mxu0 %v618_v58  ;;  %v620_v61 = vld [vmem:[#allocation3 + $0x110] sm:$0xff]  ;;  %v528_v63 = vld [vmem:[#allocation3 + $0x40] sm:$0xff] }
 0x3bc   :  { %665 = vmatprep.subr.bf16.mxu0 %v621_v59  ;;  %v623_v62 = vld [vmem:[#allocation3 + $0x128] sm:$0xff]  ;;  %v531_v0 = vld [vmem:[#allocation3 + $0x58] sm:$0xff]  ;;  %v622_v1 = vld [vmem:[#allocation3 + $0x120] sm:$0xff]  ;;  %p1013_p5 = por %p1012_p4, %p1011_p3 }
 0x3bd   :  { %555 = vmatpush1.bf16.msra.mxu1 %v522_v52  ;;  %v625_v2 = vld [vmem:[#allocation3 + $0x138] sm:$0xff]  ;;  %v530_v3 = vld [vmem:[#allocation3 + $0x50] sm:$0xff]  ;;  %v533_v4 = vld [vmem:[#allocation3 + $0x68] sm:$0xff] }
 0x3be   :  { %556 = vmatprep.subr.bf16.mxu1 %v525_v53  ;;  %v624_v6 = vld [vmem:[#allocation3 + $0x130] sm:$0xff]  ;;  %v627_v8 = vld [vmem:[#allocation3 + $0x148] sm:$0xff]  ;;  %v532_v9 = vld [vmem:[#allocation3 + $0x60] sm:$0xff]  ;;  %p1014_p6 = pnand %p1013_p5, %p1007_p2 }
 0x3bf   :  { %666 = vmatpush1.bf16.msra.mxu0 %v620_v61  ;;  %v535_v10 = vld [vmem:[#allocation3 + $0x78] sm:$0xff]  ;;  %v626_v11 = vld [vmem:[#allocation3 + $0x140] sm:$0xff]  ;;  %v534_v13 = vld [vmem:[#allocation3 + $0x70] sm:$0xff] }
 0x3c0   :  { %667 = vmatprep.subr.bf16.mxu0 %v623_v62  ;;  %v629_v12 = vld [vmem:[#allocation3 + $0x158] sm:$0xff]  ;;  %v537_v14 = vld [vmem:[#allocation3 + $0x88] sm:$0xff]  ;;  %v628_v15 = vld [vmem:[#allocation3 + $0x150] sm:$0xff] }
 0x3c1   :  { %557 = vmatpush1.bf16.msra.mxu1 %v524_v54  ;;  %v631_v16 = vld [vmem:[#allocation3 + $0x168] sm:$0xff]  ;;  %v536_v17 = vld [vmem:[#allocation3 + $0x80] sm:$0xff]  ;;  %v539_v18 = vld [vmem:[#allocation3 + $0x98] sm:$0xff] }
 0x3c2   :  { %558 = vmatprep.subr.bf16.mxu1 %v527_v55  ;;  %v630_v19 = vld [vmem:[#allocation3 + $0x160] sm:$0xff]  ;;  %v633_v20 = vld [vmem:[#allocation3 + $0x178] sm:$0xff]  ;;  %v538_v21 = vld [vmem:[#allocation3 + $0x90] sm:$0xff] }
 0x3c3   :  { %668 = vmatpush1.bf16.msra.mxu0 %v622_v1  ;;  %v541_v22 = vld [vmem:[#allocation3 + $0xa8] sm:$0xff]  ;;  %v632_v23 = vld [vmem:[#allocation3 + $0x170] sm:$0xff]  ;;  %v540_v25 = vld [vmem:[#allocation3 + $0xa0] sm:$0xff] }
 0x3c4   :  { %669 = vmatprep.subr.bf16.mxu0 %v625_v2  ;;  %v635_v24 = vld [vmem:[#allocation3 + $0x188] sm:$0xff]  ;;  %v543_v26 = vld [vmem:[#allocation3 + $0xb8] sm:$0xff]  ;;  %v634_v27 = vld [vmem:[#allocation3 + $0x180] sm:$0xff] }
 0x3c5   :  { %559 = vmatpush1.bf16.msra.mxu1 %v526_v57  ;;  %v637_v28 = vld [vmem:[#allocation3 + $0x198] sm:$0xff]  ;;  %v542_v29 = vld [vmem:[#allocation3 + $0xb0] sm:$0xff]  ;;  %v545_v30 = vld [vmem:[#allocation3 + $0xc8] sm:$0xff] }
 0x3c6   :  { %560 = vmatprep.subr.bf16.mxu1 %v529_v60  ;;  %v636_v31 = vld [vmem:[#allocation3 + $0x190] sm:$0xff]  ;;  %v639_v32 = vld [vmem:[#allocation3 + $0x1a8] sm:$0xff]  ;;  %v544_v33 = vld [vmem:[#allocation3 + $0xc0] sm:$0xff] }
 0x3c7   :  { %670 = vmatpush1.bf16.msra.mxu0 %v624_v6  ;;  %v547_v34 = vld [vmem:[#allocation3 + $0xd8] sm:$0xff]  ;;  %v638_v35 = vld [vmem:[#allocation3 + $0x1a0] sm:$0xff]  ;;  %v546_v38 = vld [vmem:[#allocation3 + $0xd0] sm:$0xff] }
 0x3c8   :  { %671 = vmatprep.subr.bf16.mxu0 %v627_v8  ;;  %v641_v36 = vld [vmem:[#allocation3 + $0x1b8] sm:$0xff]  ;;  %v549_v39 = vld [vmem:[#allocation3 + $0xe8] sm:$0xff]  ;;  %v640_v40 = vld [vmem:[#allocation3 + $0x1b0] sm:$0xff] }
 0x3c9   :  { %561 = vmatpush1.bf16.msra.mxu1 %v528_v63  ;;  %v643_v43 = vld [vmem:[#allocation3 + $0x1c8] sm:$0xff]  ;;  %v548_v44 = vld [vmem:[#allocation3 + $0xe0] sm:$0xff]  ;;  %v551_v45 = vld [vmem:[#allocation3 + $0xf8] sm:$0xff] }
 0x3ca   :  { %562 = vmatprep.subr.bf16.mxu1 %v531_v0  ;;  %v642_v47 = vld [vmem:[#allocation3 + $0x1c0] sm:$0xff]  ;;  %v645_v48 = vld [vmem:[#allocation3 + $0x1d8] sm:$0xff]  ;;  %v550_v49 = vld [vmem:[#allocation3 + $0xf0] sm:$0xff] }
 0x3cb   :  { %672 = vmatpush1.bf16.msra.mxu0 %v626_v11  ;;  %v644_v51 = vld [vmem:[#allocation3 + $0x1d0] sm:$0xff]  ;;  %v647_v52 = vld [vmem:[#allocation3 + $0x1e8] sm:$0xff]  ;;  %v646_v53 = vld [vmem:[#allocation3 + $0x1e0] sm:$0xff] }
 0x3cc   :  { %673 = vmatprep.subr.bf16.mxu0 %v629_v12  ;;  %v649_v54 = vld [vmem:[#allocation3 + $0x1f8] sm:$0xff]  ;;  %v648_v55 = vld [vmem:[#allocation3 + $0x1f0] sm:$0xff]  ;;  %v713_v56 = vld [vmem:[#allocation3 + $0x208] sm:$0xff] }
 0x3cd   :  { %563 = vmatpush1.bf16.msra.mxu1 %v530_v3  ;;  %v712_v57 = vld [vmem:[#allocation3 + $0x200] sm:$0xff]  ;;  %v715_v58 = vld [vmem:[#allocation3 + $0x218] sm:$0xff]  ;;  %v714_v37 = vld [vmem:[#allocation3 + $0x210] sm:$0xff] }
 0x3ce   :  { %564 = vmatprep.subr.bf16.mxu1 %v533_v4  ;;  %v717_v41 = vld [vmem:[#allocation3 + $0x228] sm:$0xff]  ;;  %v716_v42 = vld [vmem:[#allocation3 + $0x220] sm:$0xff]  ;;  %v719_v46 = vld [vmem:[#allocation3 + $0x238] sm:$0xff] }
 0x3cf   :  { %674 = vmatpush1.bf16.msra.mxu0 %v628_v15  ;;  %v718_v59 = vld [vmem:[#allocation3 + $0x230] sm:$0xff]  ;;  %v721_v60 = vld [vmem:[#allocation3 + $0x248] sm:$0xff]  ;;  %v720_v61 = vld [vmem:[#allocation3 + $0x240] sm:$0xff] }
 0x3d0   :  { %675 = vmatprep.subr.bf16.mxu0 %v631_v16  ;;  %v723_v62 = vld [vmem:[#allocation3 + $0x258] sm:$0xff]  ;;  %v722_v63 = vld [vmem:[#allocation3 + $0x250] sm:$0xff]  ;;  %v725_v0 = vld [vmem:[#allocation3 + $0x268] sm:$0xff] }
 0x3d1   :  { %565 = vmatpush1.bf16.msra.mxu1 %v532_v9  ;;  %v724_v1 = vld [vmem:[#allocation3 + $0x260] sm:$0xff]  ;;  %v727_v2 = vld [vmem:[#allocation3 + $0x278] sm:$0xff]  ;;  %v726_v3 = vld [vmem:[#allocation3 + $0x270] sm:$0xff] }
 0x3d2   :  { %566 = vmatprep.subr.bf16.mxu1 %v535_v10  ;;  %v729_v4 = vld [vmem:[#allocation3 + $0x288] sm:$0xff]  ;;  %v728_v6 = vld [vmem:[#allocation3 + $0x280] sm:$0xff]  ;;  %v731_v8 = vld [vmem:[#allocation3 + $0x298] sm:$0xff] }
 0x3d3   :  { %676 = vmatpush1.bf16.msra.mxu0 %v630_v19  ;;  %v730_v9 = vld [vmem:[#allocation3 + $0x290] sm:$0xff]  ;;  %v733_v10 = vld [vmem:[#allocation3 + $0x2a8] sm:$0xff]  ;;  %v732_v11 = vld [vmem:[#allocation3 + $0x2a0] sm:$0xff] }
 0x3d4   :  { %677 = vmatprep.subr.bf16.mxu0 %v633_v20  ;;  %v735_v12 = vld [vmem:[#allocation3 + $0x2b8] sm:$0xff]  ;;  %v736_v15 = vld [vmem:[#allocation3 + $0x2c0] sm:$0xff] }
 0x3d5   :  { %567 = vmatpush1.bf16.msra.mxu1 %v534_v13  ;;  %v734_v13 = vld [vmem:[#allocation3 + $0x2b0] sm:$0xff]  ;;  %v739_v16 = vld [vmem:[#allocation3 + $0x2d8] sm:$0xff] }
 0x3d6   :  { %568 = vmatprep.subr.bf16.mxu1 %v537_v14  ;;  %v737_v14 = vld [vmem:[#allocation3 + $0x2c8] sm:$0xff] }
 0x3d7   :  { %678 = vmatpush1.bf16.msra.mxu0 %v632_v23 }
 0x3d8   :  { %679 = vmatprep.subr.bf16.mxu0 %v635_v24 }
 0x3d9   :  { %569 = vmatpush1.bf16.msra.mxu1 %v536_v17  ;;  %v596_v17 = vld [vmem:[#allocation8 + $0x4] ss:$8 sm:$0x3] }
 0x3da   :  { %570 = vmatprep.subr.bf16.mxu1 %v539_v18  ;;  %v601_v18 = vrot.slane %v596_v17, %v1128_v5  ;;  %v605_v19 = vrot.slane %v596_v17, %v1130_v7 }
 0x3db   :  { %680 = vmatpush1.bf16.msra.mxu0 %v634_v27 }
 0x3dc   :  { %681 = vmatprep.subr.bf16.mxu0 %v637_v28 }
 0x3dd   :  { %571 = vmatpush1.bf16.msra.mxu1 %v538_v21 }
 0x3de   :  { %572 = vmatprep.subr.bf16.mxu1 %v541_v22 }
 0x3df   :  { %682 = vmatpush1.bf16.msra.mxu0 %v636_v31 }
 0x3e0   :  { %683 = vmatprep.subr.bf16.mxu0 %v639_v32 }
 0x3e1   :  { %573 = vmatpush1.bf16.msra.mxu1 %v540_v25 }
 0x3e2   :  { %574 = vmatprep.subr.bf16.mxu1 %v543_v26 }
 0x3e3   :  { %684 = vmatpush1.bf16.msra.mxu0 %v638_v35  ;;  %v741_v35 = vld [vmem:[#allocation3 + $0x2e8] sm:$0xff] }
 0x3e4   :  { %685 = vmatprep.subr.bf16.mxu0 %v641_v36  ;;  %v740_v36 = vld [vmem:[#allocation3 + $0x2e0] sm:$0xff] }
 0x3e5   :  { %575 = vmatpush1.bf16.msra.mxu1 %v542_v29 }
 0x3e6   :  { %576 = vmatprep.subr.bf16.mxu1 %v545_v30 }
 0x3e7   :  { %686 = vmatpush1.bf16.msra.mxu0 %v640_v40  ;;  %v807_v40 = vld [vmem:[#allocation3 + $0x308] sm:$0xff] }
 0x3e8   :  { %687 = vmatprep.subr.bf16.mxu0 %v643_v43  ;;  %v806_v43 = vld [vmem:[#allocation3 + $0x300] sm:$0xff] }
 0x3e9   :  { %577 = vmatpush1.bf16.msra.mxu1 %v544_v33 }
 0x3ea   :  { %578 = vmatprep.subr.bf16.mxu1 %v547_v34  ;;  %v738_v34 = vld [vmem:[#allocation3 + $0x2d0] sm:$0xff] }
 0x3eb   :  { %688 = vmatpush1.bf16.msra.mxu0 %v642_v47  ;;  %v811_v47 = vld [vmem:[#allocation3 + $0x328] sm:$0xff] }
 0x3ec   :  { %689 = vmatprep.subr.bf16.mxu0 %v645_v48  ;;  %v810_v48 = vld [vmem:[#allocation3 + $0x320] sm:$0xff] }
 0x3ed   :  { %579 = vmatpush1.bf16.msra.mxu1 %v546_v38  ;;  %v743_v38 = vld [vmem:[#allocation3 + $0x2f8] sm:$0xff] }
 0x3ee   :  { %580 = vmatprep.subr.bf16.mxu1 %v549_v39  ;;  %v742_v39 = vld [vmem:[#allocation3 + $0x2f0] sm:$0xff] }
 0x3ef   :  { %690 = vmatpush1.bf16.msra.mxu0 %v644_v51  ;;  %v815_v51 = vld [vmem:[#allocation3 + $0x348] sm:$0xff] }
 0x3f0   :  { %691 = vmatprep.subr.bf16.mxu0 %v647_v52  ;;  %v814_v52 = vld [vmem:[#allocation3 + $0x340] sm:$0xff] }
 0x3f1   :  { %581 = vmatpush1.bf16.msra.mxu1 %v548_v44  ;;  %v809_v44 = vld [vmem:[#allocation3 + $0x318] sm:$0xff] }
 0x3f2   :  { %582 = vmatprep.subr.bf16.mxu1 %v551_v45  ;;  %v808_v45 = vld [vmem:[#allocation3 + $0x310] sm:$0xff] }
 0x3f3   :  { %692 = vmatpush1.bf16.msra.mxu0 %v646_v53  ;;  %v817_v53 = vld [vmem:[#allocation3 + $0x358] sm:$0xff] }
 0x3f4   :  { %693 = vmatprep.subr.bf16.mxu0 %v649_v54  ;;  %v816_v54 = vld [vmem:[#allocation3 + $0x350] sm:$0xff] }
 0x3f5   :  { %583 = vmatpush1.bf16.msra.mxu1 %v550_v49  ;;  %v813_v49 = vld [vmem:[#allocation3 + $0x338] sm:$0xff] }
 0x3f6   :  { %757 = vmatprep.subr.bf16.mxu1 %v713_v56  ;;  %v818_v56 = vld [vmem:[#allocation3 + $0x360] sm:$0xff] }
 0x3f7   :  { %694 = vmatpush1.bf16.msra.mxu0 %v648_v55  ;;  %v819_v55 = vld [vmem:[#allocation3 + $0x368] sm:$0xff] }
 0x3f8   :  { %585 = vmatmul.mubr.bf16.vlgmr.msra.gmra.mrb[4].mxu1 %v518_v50  ;;  %851 = vmatprep.subr.bf16.mxu0 %v807_v40  ;;  %v812_v50 = vld [vmem:[#allocation3 + $0x330] sm:$0xff] }
 0x3f9   :  { %758 = vmatpush1.bf16.msra.mxu1 %v712_v57  ;;  %v821_v57 = vld [vmem:[#allocation3 + $0x378] sm:$0xff] }
 0x3fa   :  { %759 = vmatprep.subr.bf16.mxu1 %v715_v58  ;;  %v820_v58 = vld [vmem:[#allocation3 + $0x370] sm:$0xff] }
 0x3fd   :  { %760 = vmatpush1.bf16.msra.mxu1 %v714_v37  ;;  %v823_v37 = vld [vmem:[#allocation3 + $0x388] sm:$0xff] }
 0x3fe   :  { %761 = vmatprep.subr.bf16.mxu1 %v717_v41  ;;  %v822_v41 = vld [vmem:[#allocation3 + $0x380] sm:$0xff] }
 0x401   :  { %762 = vmatpush1.bf16.msra.mxu1 %v716_v42  ;;  %v825_v42 = vld [vmem:[#allocation3 + $0x398] sm:$0xff] }
 0x402   :  { %763 = vmatprep.subr.bf16.mxu1 %v719_v46  ;;  %v824_v46 = vld [vmem:[#allocation3 + $0x390] sm:$0xff] }
 0x405   :  { %764 = vmatpush1.bf16.msra.mxu1 %v718_v59  ;;  %v827_v59 = vld [vmem:[#allocation3 + $0x3a8] sm:$0xff] }
 0x406   :  { %765 = vmatprep.subr.bf16.mxu1 %v721_v60  ;;  %v826_v60 = vld [vmem:[#allocation3 + $0x3a0] sm:$0xff] }
 0x409   :  { %766 = vmatpush1.bf16.msra.mxu1 %v720_v61  ;;  %v829_v61 = vld [vmem:[#allocation3 + $0x3b8] sm:$0xff] }
 0x40a   :  { %767 = vmatprep.subr.bf16.mxu1 %v723_v62  ;;  %v828_v62 = vld [vmem:[#allocation3 + $0x3b0] sm:$0xff] }
 0x40d   :  { %768 = vmatpush1.bf16.msra.mxu1 %v722_v63  ;;  %v831_v63 = vld [vmem:[#allocation3 + $0x3c8] sm:$0xff] }
 0x40e   :  { %769 = vmatprep.subr.bf16.mxu1 %v725_v0  ;;  %v830_v0 = vld [vmem:[#allocation3 + $0x3c0] sm:$0xff] }
 0x411   :  { %770 = vmatpush1.bf16.msra.mxu1 %v724_v1  ;;  %v833_v1 = vld [vmem:[#allocation3 + $0x3d8] sm:$0xff] }
 0x412   :  { %771 = vmatprep.subr.bf16.mxu1 %v727_v2  ;;  %v651_v2 = vld [vmem:[#allocation8 + $0x5] ss:$8 sm:$0x3] }
 0x415   :  { %772 = vmatpush1.bf16.msra.mxu1 %v726_v3  ;;  %v656_v3 = vrot.slane %v651_v2, %v1128_v5 }
 0x416   :  { %773 = vmatprep.subr.bf16.mxu1 %v729_v4  ;;  %v660_v4 = vrot.slane %v651_v2, %v1130_v7 }
 0x419   :  { %774 = vmatpush1.bf16.msra.mxu1 %v728_v6 }
 0x41a   :  { %775 = vmatprep.subr.bf16.mxu1 %v731_v8 }
 0x41d   :  { %776 = vmatpush1.bf16.msra.mxu1 %v730_v9 }
 0x41e   :  { %777 = vmatprep.subr.bf16.mxu1 %v733_v10 }
 0x421   :  { %778 = vmatpush1.bf16.msra.mxu1 %v732_v11 }
 0x422   :  { %779 = vmatprep.subr.bf16.mxu1 %v735_v12 }
 0x425   :  { %780 = vmatpush1.bf16.msra.mxu1 %v734_v13 }
 0x426   :  { %781 = vmatprep.subr.bf16.mxu1 %v737_v14 }
 0x429   :  { %782 = vmatpush1.bf16.msra.mxu1 %v736_v15 }
 0x42a   :  { %783 = vmatprep.subr.bf16.mxu1 %v739_v16 }
 0x42d   :  { %784 = vmatpush1.bf16.msra.mxu1 %v738_v34 }
 0x42e   :  { %785 = vmatprep.subr.bf16.mxu1 %v741_v35 }
 0x431   :  { %786 = vmatpush1.bf16.msra.mxu1 %v740_v36 }
 0x432   :  { %787 = vmatprep.subr.bf16.mxu1 %v743_v38 }
 0x435   :  { %788 = vmatpush1.bf16.msra.mxu1 %v742_v39 }
 0x4cb   :  { %v586_v20 = vpop.f32.mrb[4].mxu1 }
 0x4cc   :  { %v608_v21 = vadd.f32 %v601_v18, %v586_v20  ;;  %v588_v22 = vpop.f32.mrb[5].mxu1 }
 0x4cd   :  { %v609_v23 = vadd.f32 %v605_v19, %v588_v22  ;;  %v590_v24 = vpop.f32.mrb[6].mxu1  ;;  %v835_v22 = vld [vmem:[#allocation3 + $0x3e8] sm:$0xff] }
 0x4ce   :  { %v610_v25 = vadd.f32 %v601_v18, %v590_v24  ;;  %v592_v26 = vpop.f32.mrb[7].mxu1  ;;  %v612_v28 = vmax.f32 %v608_v21, 0.0  ;;  %v832_v21 = vld [vmem:[#allocation3 + $0x3d0] sm:$0xff]  ;;  %v837_v24 = vld [vmem:[#allocation3 + $0x3f8] sm:$0xff] }
 0x4cf   :  { %v611_v27 = vadd.f32 %v605_v19, %v592_v26  ;;  %v613_v30 = vmax.f32 %v609_v23, 0.0  ;;  %v834_v23 = vld [vmem:[#allocation3 + $0x3e0] sm:$0xff]  ;;  %v745_v26 = vld [vmem:[#allocation8 + $0x6] ss:$8 sm:$0x3] }
 0x4d0   :  { %v614_v29 = vmax.f32 %v610_v25, 0.0  ;;  %v836_v25 = vld [vmem:[#allocation3 + $0x3f0] sm:$0xff] }
 0x4d1   :  { %v615_v31 = vmax.f32 %v611_v27, 0.0  ;;  %v750_v27 = vrot.slane %v745_v26, %v1128_v5 }
 0x4d2   :  { %v616_v32 = vpack.c.bf16 %v614_v29, %v612_v28  ;;  %v754_v28 = vrot.slane %v745_v26, %v1130_v7 }
 0x4d3   :  { %v617_v33 = vpack.c.bf16 %v615_v31, %v613_v30 }
 0x4d5   :  { %695 = vmatprep.mubr.bf16.mxu0 %v617_v33 }
 0x4d6   :  { %696 = vmatmul.mubr.bf16.vlgmr.msra.gmra.mrb[8].mxu0 %v616_v32 }
 0x4d7   :  { %852 = vmatpush1.bf16.msra.mxu0 %v806_v43 }
 0x4d8   :  { %853 = vmatprep.subr.bf16.mxu0 %v809_v44 }
 0x4db   :  { %854 = vmatpush1.bf16.msra.mxu0 %v808_v45 }
 0x4dc   :  { %855 = vmatprep.subr.bf16.mxu0 %v811_v47  ;;  %v839_v47 = vld [vmem:[#allocation8 + $0x7] ss:$8 sm:$0x3] }
 0x4df   :  { %856 = vmatpush1.bf16.msra.mxu0 %v810_v48  ;;  %v844_v48 = vrot.slane %v839_v47, %v1128_v5 }
 0x4e0   :  { %857 = vmatprep.subr.bf16.mxu0 %v813_v49  ;;  %v848_v49 = vrot.slane %v839_v47, %v1130_v7 }
 0x4e3   :  { %858 = vmatpush1.bf16.msra.mxu0 %v812_v50 }
 0x4e4   :  { %859 = vmatprep.subr.bf16.mxu0 %v815_v51 }
 0x4e7   :  { %860 = vmatpush1.bf16.msra.mxu0 %v814_v52 }
 0x4e8   :  { %861 = vmatprep.subr.bf16.mxu0 %v817_v53 }
 0x4eb   :  { %862 = vmatpush1.bf16.msra.mxu0 %v816_v54 }
 0x4ec   :  { %863 = vmatprep.subr.bf16.mxu0 %v819_v55 }
 0x4ef   :  { %864 = vmatpush1.bf16.msra.mxu0 %v818_v56 }
 0x4f0   :  { %865 = vmatprep.subr.bf16.mxu0 %v821_v57 }
 0x4f3   :  { %866 = vmatpush1.bf16.msra.mxu0 %v820_v58 }
 0x4f4   :  { %867 = vmatprep.subr.bf16.mxu0 %v823_v37 }
 0x4f7   :  { %868 = vmatpush1.bf16.msra.mxu0 %v822_v41 }
 0x4f8   :  { %869 = vmatprep.subr.bf16.mxu0 %v825_v42 }
 0x4fb   :  { %870 = vmatpush1.bf16.msra.mxu0 %v824_v46 }
 0x4fc   :  { %871 = vmatprep.subr.bf16.mxu0 %v827_v59 }
 0x4ff   :  { %872 = vmatpush1.bf16.msra.mxu0 %v826_v60 }
 0x500   :  { %873 = vmatprep.subr.bf16.mxu0 %v829_v61 }
 0x503   :  { %874 = vmatpush1.bf16.msra.mxu0 %v828_v62 }
 0x504   :  { %875 = vmatprep.subr.bf16.mxu0 %v831_v63 }
 0x507   :  { %876 = vmatpush1.bf16.msra.mxu0 %v830_v0 }
 0x508   :  { %877 = vmatprep.subr.bf16.mxu0 %v833_v1 }
 0x50b   :  { %878 = vmatpush1.bf16.msra.mxu0 %v832_v21 }
 0x50c   :  { %879 = vmatprep.subr.bf16.mxu0 %v835_v22 }
 0x50f   :  { %880 = vmatpush1.bf16.msra.mxu0 %v834_v23 }
 0x510   :  { %881 = vmatprep.subr.bf16.mxu0 %v837_v24 }
 0x513   :  { %882 = vmatpush1.bf16.msra.mxu0 %v836_v25 }
 0x5a9   :  { %v697_v6 = vpop.f32.mrb[8].mxu0 }
 0x5aa   :  { %v698_v8 = vadd.f32 %v697_v6, %v656_v3  ;;  %v699_v9 = vpop.f32.mrb[9].mxu0 }
 0x5ab   :  { %v700_v10 = vadd.f32 %v699_v9, %v660_v4  ;;  %v701_v11 = vpop.f32.mrb[10].mxu0 }
 0x5ac   :  { %v702_v12 = vadd.f32 %v701_v11, %v656_v3  ;;  %v703_v13 = vpop.f32.mrb[11].mxu0  ;;  %v706_v15 = vmax.f32 %v698_v8, 0.0 }
 0x5ad   :  { %v704_v14 = vadd.f32 %v703_v13, %v660_v4  ;;  %v707_v17 = vmax.f32 %v700_v10, 0.0 }
 0x5ae   :  { %v708_v16 = vmax.f32 %v702_v12, 0.0 }
 0x5af   :  { %v709_v18 = vmax.f32 %v704_v14, 0.0 }
 0x5b0   :  { %v710_v19 = vpack.c.bf16 %v708_v16, %v706_v15 }
 0x5b1   :  { %v711_v20 = vpack.c.bf16 %v709_v18, %v707_v17 }
 0x5b3   :  { %789 = vmatprep.mubr.bf16.mxu1 %v711_v20 }
 0x5b4   :  { %790 = vmatmul.mubr.bf16.vlgmr.msra.gmra.mrb[12].mxu1 %v710_v19 }
 0x687   :  { %v791_v29 = vpop.f32.mrb[12].mxu1 }
 0x688   :  { %v792_v30 = vadd.f32 %v791_v29, %v750_v27  ;;  %v793_v31 = vpop.f32.mrb[13].mxu1 }
 0x689   :  { %v794_v32 = vadd.f32 %v793_v31, %v754_v28  ;;  %v795_v33 = vpop.f32.mrb[14].mxu1 }
 0x68a   :  { %v796_v34 = vadd.f32 %v795_v33, %v750_v27  ;;  %v797_v35 = vpop.f32.mrb[15].mxu1  ;;  %v800_v38 = vmax.f32 %v792_v30, 0.0 }
 0x68b   :  { %v798_v36 = vadd.f32 %v797_v35, %v754_v28  ;;  %v801_v40 = vmax.f32 %v794_v32, 0.0 }
 0x68c   :  { %v802_v39 = vmax.f32 %v796_v34, 0.0 }
 0x68d   :  { %v803_v43 = vmax.f32 %v798_v36, 0.0 }
 0x68e   :  { %v804_v44 = vpack.c.bf16 %v802_v39, %v800_v38 }
 0x68f   :  { %v805_v45 = vpack.c.bf16 %v803_v43, %v801_v40 }
 0x691   :  { %883 = vmatprep.mubr.bf16.mxu0 %v805_v45 }
 0x692   :  { %884 = vmatmul.mubr.bf16.vlgmr.msra.gmra.mrb[12].mxu0 %v804_v44 }
 0x765   :  { %v885_v50 = vpop.f32.mrb[12].mxu0 }
 0x766   :  { %v886_v51 = vadd.f32 %v885_v50, %v844_v48  ;;  %v887_v52 = vpop.f32.mrb[13].mxu0 }
 0x767   :  { %v888_v53 = vadd.f32 %v887_v52, %v848_v49  ;;  %v889_v54 = vpop.f32.mrb[14].mxu0 }
 0x768   :  { %v894_v55 = vmax.f32 %v886_v51, 0.0  ;;  %v890_v56 = vadd.f32 %v889_v54, %v844_v48  ;;  %v891_v57 = vpop.f32.mrb[15].mxu0 }
 0x769   :  { %v895_v58 = vmax.f32 %v888_v53, 0.0  ;;  %v892_v37 = vadd.f32 %v891_v57, %v848_v49 }
 0x76a   :  { %898 = vst [vmem:[#allocation10] sm:$0xff] %v894_v55  ;;  %v896_v41 = vmax.f32 %v890_v56, 0.0 }
 0x76b   :  { %899 = vst [vmem:[#allocation10 + $0x8] sm:$0xff] %v895_v58  ;;  %v897_v42 = vmax.f32 %v892_v37, 0.0 }
 0x76c   :  { %900 = vst [vmem:[#allocation10 + $0x10] sm:$0xff] %v896_v41 }
 0x76d   :  { %901 = vst [vmem:[#allocation10 + $0x18] sm:$0xff] %v897_v42 }
 0x76e   :  { %1017 = shalt.err (!%p1014_p6)
}
 0x76f   :  { %s1018_s8 = scalar_lea.hbm %s1176_s4, 512 }
 0x770   :  { %p1019_p7 = scmp.ne.s32.totalorder %s1176_s4, %s1018_s8  ;;  %p1022_p8 = scmp.lt.u32.totalorder %s1018_s8, %s1176_s4 }
 0x772   :  { %p1024_p9 = pnand %p1022_p8, %p1019_p7 }
 0x774   :  { %1027 = shalt.err (!%p1024_p9)
}
 0x775   :  { %s1053_s0 = smov 16  }
 0x776   :  { %913 = dma.vmem_to_hbm [thread:$0]  %s908_s25, 512, %s1176_s4, [#allocation7], %s1043_s17, %s1043_s17, %s1053_s0  }
 0x777   :  { %1036 = dma.done.wait [#allocation7], 512  }
 0x778   :  { %1037 = vsyncadd [#allocation7], 4294966784 }
 0x779   :  { %917 = vsyncpa [#allocation6], 1 }
 0x77a   :  { %918 = vsyncpa [#allocation9], 1 }
 0x77b   :  { %919 = vsyncpa [#allocation7], 1 }
 0x77c   :  { %920 = vsyncmov [#allocation4] }
 0x77f   :  { %s921_s15 = vpop.sfrf %920 }
 0x780   :  { %p940_p10 = scmp.ne.s32.totalorder %s921_s15, 0 }
 0x782   :  { %925 = shalt.err (%p940_p10)  }
 0x783   :  { %927 = vsyncmov [#allocation4 + $0x1] }
 0x786   :  { %s928_s16 = vpop.sfrf %927 }
 0x787   :  { %p941_p11 = scmp.ne.s32.totalorder %s928_s16, 0 }
 0x789   :  { %932 = shalt.err (%p941_p11)  }

</bundles_post_ra>
